<compile_context>
chip_gen: v7x
topology: tpu7x:2x2x1
jax: 0.10.0
libtpu: 0.0.40
codegen_flags: <defaults>
</compile_context>

<pallas_src>
import jax
import jax.numpy as jnp
from jax.experimental import pallas as pl
from jax.experimental.pallas import tpu as pltpu

# Keep f32 matmuls exact so the Pallas path and the pure-JAX reference agree to ~1e-6
# even though they place the same math on different units (MXU vs VPU).
_HIGHEST = jax.lax.Precision.HIGHEST


def attention_kernel(feat_ref, dec_ref, u_w_ref, u_b_ref, w_w_ref, w_b_ref,
                     v_w_ref, ctx_ref, alpha_ref):
    B, L, F = feat_ref.shape
    H = u_w_ref.shape[1]

    feat = feat_ref[...]                                        # (B, L, F)

    # u-projection: fold batch into the MXU M-dimension -> (B*L, F) @ (F, H).
    enc_att = jnp.dot(feat.reshape(B * L, F), u_w_ref[...],
                      preferred_element_type=jnp.float32,
                      precision=_HIGHEST).reshape(B, L, H)

    # w-projection for the whole batch at once: (B, D) @ (D, H).
    dec_att = jnp.dot(dec_ref[...], w_w_ref[...],
                      preferred_element_type=jnp.float32,
                      precision=_HIGHEST)                        # (B, H)

    bias = u_b_ref[...] + w_b_ref[...]                           # (1, H)
    out = jnp.tanh(enc_att + dec_att.reshape(B, 1, H) + bias)    # (B, L, H)

    # v-projection (output width 1): VPU multiply + lane reduction, not an N=1
    # MXU matmul. v_b is dropped — softmax over L is shift-invariant.
    e = jnp.sum(out * v_w_ref[...], axis=-1)                     # (B, L), lane-dense

    # numerically stable softmax over the sequence axis (lanes)
    m = jnp.max(e, axis=-1, keepdims=True)
    p = jnp.exp(e - m)
    alpha = p / jnp.sum(p, axis=-1, keepdims=True)               # (B, L)

    # context = alpha @ feature per batch, as a batched MXU matmul:
    # (B, 1, L) @ (B, L, F) -> (B, 1, F), lane-dense along F.
    ctx = jnp.einsum('bql,blf->bqf', alpha.reshape(B, 1, L), feat,
                     preferred_element_type=jnp.float32,
                     precision=_HIGHEST)
    ctx_ref[...] = ctx.reshape(B, F)
    alpha_ref[...] = alpha


def attention_forward(feature, decoder_hidden, params):
    """feature: (B, L, F) f32, decoder_hidden: (B, D) f32 -> (context (B,F), alpha (B,L))."""
    B, L, F = feature.shape
    D = decoder_hidden.shape[1]
    H = params["u_w"].shape[1]

    v_row = params["v_w"].reshape(1, H)      # (H, 1) -> (1, H) row for the VPU path

    ctx, alpha = pl.pallas_call(
        attention_kernel,
        out_shape=(
            jax.ShapeDtypeStruct((B, F), jnp.float32),
            jax.ShapeDtypeStruct((B, L), jnp.float32),
        ),
        grid_spec=pltpu.PrefetchScalarGridSpec(
            num_scalar_prefetch=0,
            grid=(1,),                        # single fused step: whole batch at once
            in_specs=[
                pl.BlockSpec((B, L, F), lambda i: (0, 0, 0)),   # feature
                pl.BlockSpec((B, D), lambda i: (0, 0)),         # decoder_hidden
                pl.BlockSpec((F, H), lambda i: (0, 0)),         # u_w
                pl.BlockSpec((1, H), lambda i: (0, 0)),         # u_b
                pl.BlockSpec((D, H), lambda i: (0, 0)),         # w_w
                pl.BlockSpec((1, H), lambda i: (0, 0)),         # w_b
                pl.BlockSpec((1, H), lambda i: (0, 0)),         # v_w (row)
            ],
            out_specs=[
                pl.BlockSpec((B, F), lambda i: (0, 0)),         # context (lane-dense)
                pl.BlockSpec((B, L), lambda i: (0, 0)),         # alpha   (lane-dense)
            ],
        ),
        compiler_params=pltpu.CompilerParams(
            dimension_semantics=("arbitrary",)),
    )(feature, decoder_hidden,
      params["u_w"], params["u_b"], params["w_w"], params["w_b"], v_row)
    return ctx, alpha


def reference_forward(feature, decoder_hidden, params):
    enc = jnp.dot(feature, params["u_w"], precision=_HIGHEST) + params["u_b"]
    dec = (jnp.dot(decoder_hidden, params["w_w"], precision=_HIGHEST)
           + params["w_b"])[:, None, :]
    out = jnp.tanh(enc + dec)
    e = (jnp.dot(out, params["v_w"], precision=_HIGHEST) + params["v_b"])[..., 0]
    alpha = jax.nn.softmax(e, axis=1)
    ctx = jnp.sum(feature * alpha[..., None], axis=1)
    return ctx, alpha


def init_params(key, feature_size, decoder_hidden_size, hidden_size):
    ks = jax.random.split(key, 6)

    def lin(kw, kb, fan_in, fan_out):
        bound = 1.0 / (fan_in ** 0.5)
        w = jax.random.uniform(kw, (fan_in, fan_out), jnp.float32, -bound, bound)
        b = jax.random.uniform(kb, (1, fan_out), jnp.float32, -bound, bound)
        return w, b

    u_w, u_b = lin(ks[0], ks[1], feature_size, hidden_size)
    w_w, w_b = lin(ks[2], ks[3], decoder_hidden_size, hidden_size)
    v_w, v_b = lin(ks[4], ks[5], hidden_size, 1)
    return dict(u_w=u_w, u_b=u_b, w_w=w_w, w_b=w_b, v_w=v_w, v_b=v_b)


if __name__ == "__main__":
    B, L, F, D, H = 2, 8, 32, 16, 32   # batch, seq, feature, decoder_hidden, hidden

    key = jax.random.PRNGKey(0)
    k_feat, k_dec, k_param = jax.random.split(key, 3)
    feature = jax.random.normal(k_feat, (B, L, F), jnp.float32)
    decoder_hidden = jax.random.normal(k_dec, (B, D), jnp.float32)
    params = init_params(k_param, F, D, H)

    ctx, alpha = attention_forward(feature, decoder_hidden, params)
    ctx, alpha = jax.block_until_ready((ctx, alpha))

    ctx_ref, alpha_ref = reference_forward(feature, decoder_hidden, params)
    assert ctx.shape == (B, F) and alpha.shape == (B, L)
    # observed error ~1e-6 with HIGHEST-precision matmuls on both paths
    assert jnp.allclose(ctx, ctx_ref, atol=1e-4, rtol=1e-4)
    assert jnp.allclose(alpha, alpha_ref, atol=1e-4, rtol=1e-4)
    print("KERNEL_OK")
</pallas_src>

<mosaic_0001>
module attributes {stable_mosaic.version = 11 : i64} {
  func.func @attention_kernel(%arg0: i32, %arg1: memref<2x8x32xf32, #tpu.memory_space<vmem>>, %arg2: memref<2x16xf32, #tpu.memory_space<vmem>>, %arg3: memref<32x32xf32, #tpu.memory_space<vmem>>, %arg4: memref<1x32xf32, #tpu.memory_space<vmem>>, %arg5: memref<16x32xf32, #tpu.memory_space<vmem>>, %arg6: memref<1x32xf32, #tpu.memory_space<vmem>>, %arg7: memref<1x32xf32, #tpu.memory_space<vmem>>, %arg8: memref<2x32xf32, #tpu.memory_space<vmem>>, %arg9: memref<2x8xf32, #tpu.memory_space<vmem>>) attributes {dimension_semantics = [#tpu.dimension_semantics<arbitrary>], iteration_bounds = array<i64: 1>, scalar_prefetch = 0 : i64, scratch_operands = 0 : i64, tpu.core_type = #tpu.core_type<tc>, window_params = [{pipeline_mode = #tpu.pipeline_mode<synchronous>, transform_indices = @transform_0, window_bounds = array<i64: 2, 8, 32>}, {pipeline_mode = #tpu.pipeline_mode<synchronous>, transform_indices = @transform_1, window_bounds = array<i64: 2, 16>}, {pipeline_mode = #tpu.pipeline_mode<synchronous>, transform_indices = @transform_2, window_bounds = array<i64: 32, 32>}, {pipeline_mode = #tpu.pipeline_mode<synchronous>, transform_indices = @transform_3, window_bounds = array<i64: 1, 32>}, {pipeline_mode = #tpu.pipeline_mode<synchronous>, transform_indices = @transform_4, window_bounds = array<i64: 16, 32>}, {pipeline_mode = #tpu.pipeline_mode<synchronous>, transform_indices = @transform_5, window_bounds = array<i64: 1, 32>}, {pipeline_mode = #tpu.pipeline_mode<synchronous>, transform_indices = @transform_6, window_bounds = array<i64: 1, 32>}, {pipeline_mode = #tpu.pipeline_mode<synchronous>, transform_indices = @transform_7, window_bounds = array<i64: 2, 32>}, {pipeline_mode = #tpu.pipeline_mode<synchronous>, transform_indices = @transform_8, window_bounds = array<i64: 2, 8>}]} {
    %c0 = arith.constant 0 : index
    %c0_0 = arith.constant 0 : index
    %c0_1 = arith.constant 0 : index
    %0 = vector.load %arg1[%c0, %c0_0, %c0_1] : memref<2x8x32xf32, #tpu.memory_space<vmem>>, vector<2x8x32xf32>
    %1 = vector.shape_cast %0 : vector<2x8x32xf32> to vector<16x32xf32>
    %c0_2 = arith.constant 0 : index
    %c0_3 = arith.constant 0 : index
    %2 = vector.load %arg3[%c0_2, %c0_3] : memref<32x32xf32, #tpu.memory_space<vmem>>, vector<32x32xf32>
    %cst = arith.constant dense<0.000000e+00> : vector<16x32xf32>
    %3 = tpu.matmul %1, %2, %cst {dimension_numbers = #tpu.dot_dimension_numbers<[1], [0], [0], [1], [0, 0, 1, 1], [], []>, precision = #tpu.contract_precision<fp32>} : vector<16x32xf32>, vector<32x32xf32>, vector<16x32xf32> -> vector<16x32xf32>
    %4 = vector.shape_cast %3 : vector<16x32xf32> to vector<2x8x32xf32>
    %c0_4 = arith.constant 0 : index
    %c0_5 = arith.constant 0 : index
    %5 = vector.load %arg2[%c0_4, %c0_5] : memref<2x16xf32, #tpu.memory_space<vmem>>, vector<2x16xf32>
    %c0_6 = arith.constant 0 : index
    %c0_7 = arith.constant 0 : index
    %6 = vector.load %arg5[%c0_6, %c0_7] : memref<16x32xf32, #tpu.memory_space<vmem>>, vector<16x32xf32>
    %cst_8 = arith.constant dense<0.000000e+00> : vector<2x32xf32>
    %7 = tpu.matmul %5, %6, %cst_8 {dimension_numbers = #tpu.dot_dimension_numbers<[1], [0], [0], [1], [0, 0, 1, 1], [], []>, precision = #tpu.contract_precision<fp32>} : vector<2x16xf32>, vector<16x32xf32>, vector<2x32xf32> -> vector<2x32xf32>
    %c0_9 = arith.constant 0 : index
    %c0_10 = arith.constant 0 : index
    %8 = vector.load %arg4[%c0_9, %c0_10] : memref<1x32xf32, #tpu.memory_space<vmem>>, vector<1x32xf32>
    %c0_11 = arith.constant 0 : index
    %c0_12 = arith.constant 0 : index
    %9 = vector.load %arg6[%c0_11, %c0_12] : memref<1x32xf32, #tpu.memory_space<vmem>>, vector<1x32xf32>
    %10 = arith.addf %8, %9 : vector<1x32xf32>
    %11 = vector.shape_cast %7 : vector<2x32xf32> to vector<2x1x32xf32>
    %12 = vector.broadcast %11 : vector<2x1x32xf32> to vector<2x8x32xf32>
    %13 = arith.addf %4, %12 : vector<2x8x32xf32>
    %14 = vector.shape_cast %10 : vector<1x32xf32> to vector<1x1x32xf32>
    %15 = vector.broadcast %14 : vector<1x1x32xf32> to vector<2x8x32xf32>
    %16 = arith.addf %13, %15 : vector<2x8x32xf32>
    %17 = math.tanh %16 : vector<2x8x32xf32>
    %c0_13 = arith.constant 0 : index
    %c0_14 = arith.constant 0 : index
    %18 = vector.load %arg7[%c0_13, %c0_14] : memref<1x32xf32, #tpu.memory_space<vmem>>, vector<1x32xf32>
    %19 = vector.shape_cast %18 : vector<1x32xf32> to vector<1x1x32xf32>
    %20 = vector.broadcast %19 : vector<1x1x32xf32> to vector<2x8x32xf32>
    %21 = arith.mulf %17, %20 : vector<2x8x32xf32>
    %cst_15 = arith.constant dense<0.000000e+00> : vector<2x8xf32>
    %22 = vector.multi_reduction <add>, %21, %cst_15 [2] : vector<2x8x32xf32> to vector<2x8xf32>
    %cst_16 = arith.constant dense<0xFF800000> : vector<2xf32>
    %23 = vector.multi_reduction <maximumf>, %22, %cst_16 [1] : vector<2x8xf32> to vector<2xf32>
    %24 = vector.shape_cast %23 : vector<2xf32> to vector<2x1xf32>
    %25 = vector.broadcast %24 : vector<2x1xf32> to vector<2x8xf32>
    %26 = arith.subf %22, %25 : vector<2x8xf32>
    %27 = math.exp %26 : vector<2x8xf32>
    %cst_17 = arith.constant dense<0.000000e+00> : vector<2xf32>
    %28 = vector.multi_reduction <add>, %27, %cst_17 [1] : vector<2x8xf32> to vector<2xf32>
    %29 = vector.shape_cast %28 : vector<2xf32> to vector<2x1xf32>
    %30 = vector.broadcast %29 : vector<2x1xf32> to vector<2x8xf32>
    %31 = arith.divf %27, %30 : vector<2x8xf32>
    %32 = vector.shape_cast %31 : vector<2x8xf32> to vector<2x1x8xf32>
    "tpu.trace_start"() <{level = 10 : i32, message = "bql,blf->bqf"}> : () -> ()
    %cst_18 = arith.constant dense<0.000000e+00> : vector<2x1x32xf32>
    %33 = tpu.matmul %32, %0, %cst_18 {dimension_numbers = #tpu.dot_dimension_numbers<[2], [1], [1], [2], [0, 0, 0, 1, 1, 2], [0], [0]>, precision = #tpu.contract_precision<fp32>} : vector<2x1x8xf32>, vector<2x8x32xf32>, vector<2x1x32xf32> -> vector<2x1x32xf32>
    "tpu.trace_stop"() : () -> ()
    %34 = vector.shape_cast %33 : vector<2x1x32xf32> to vector<2x32xf32>
    %c0_19 = arith.constant 0 : index
    %c0_20 = arith.constant 0 : index
    %35 = vector.load %arg8[%c0_19, %c0_20] : memref<2x32xf32, #tpu.memory_space<vmem>>, vector<2x32xf32>
    tpu.vector_store %arg8[%c0_19, %c0_20], %34 {strides = array<i32>} : memref<2x32xf32, #tpu.memory_space<vmem>>, vector<2x32xf32>,
    %c0_21 = arith.constant 0 : index
    %c0_22 = arith.constant 0 : index
    %36 = vector.load %arg9[%c0_21, %c0_22] : memref<2x8xf32, #tpu.memory_space<vmem>>, vector<2x8xf32>
    tpu.vector_store %arg9[%c0_21, %c0_22], %31 {strides = array<i32>} : memref<2x8xf32, #tpu.memory_space<vmem>>, vector<2x8xf32>,
    return
  }
  func.func @transform_0(%arg0: i32) -> (i32, i32, i32) {
    %c0_i32 = arith.constant 0 : i32
    %c0_i32_0 = arith.constant 0 : i32
    %c0_i32_1 = arith.constant 0 : i32
    %c0_i32_2 = arith.constant 0 : i32
    return %c0_i32, %c0_i32_0, %c0_i32_1 : i32, i32, i32
  }
  func.func @transform_1(%arg0: i32) -> (i32, i32) {
    %c0_i32 = arith.constant 0 : i32
    %c0_i32_0 = arith.constant 0 : i32
    %c0_i32_1 = arith.constant 0 : i32
    return %c0_i32, %c0_i32_0 : i32, i32
  }
  func.func @transform_2(%arg0: i32) -> (i32, i32) {
    %c0_i32 = arith.constant 0 : i32
    %c0_i32_0 = arith.constant 0 : i32
    %c0_i32_1 = arith.constant 0 : i32
    return %c0_i32, %c0_i32_0 : i32, i32
  }
  func.func @transform_3(%arg0: i32) -> (i32, i32) {
    %c0_i32 = arith.constant 0 : i32
    %c0_i32_0 = arith.constant 0 : i32
    %c0_i32_1 = arith.constant 0 : i32
    return %c0_i32, %c0_i32_0 : i32, i32
  }
  func.func @transform_4(%arg0: i32) -> (i32, i32) {
    %c0_i32 = arith.constant 0 : i32
    %c0_i32_0 = arith.constant 0 : i32
    %c0_i32_1 = arith.constant 0 : i32
    return %c0_i32, %c0_i32_0 : i32, i32
  }
  func.func @transform_5(%arg0: i32) -> (i32, i32) {
    %c0_i32 = arith.constant 0 : i32
    %c0_i32_0 = arith.constant 0 : i32
    %c0_i32_1 = arith.constant 0 : i32
    return %c0_i32, %c0_i32_0 : i32, i32
  }
  func.func @transform_6(%arg0: i32) -> (i32, i32) {
    %c0_i32 = arith.constant 0 : i32
    %c0_i32_0 = arith.constant 0 : i32
    %c0_i32_1 = arith.constant 0 : i32
    return %c0_i32, %c0_i32_0 : i32, i32
  }
  func.func @transform_7(%arg0: i32) -> (i32, i32) {
    %c0_i32 = arith.constant 0 : i32
    %c0_i32_0 = arith.constant 0 : i32
    %c0_i32_1 = arith.constant 0 : i32
    return %c0_i32, %c0_i32_0 : i32, i32
  }
  func.func @transform_8(%arg0: i32) -> (i32, i32) {
    %c0_i32 = arith.constant 0 : i32
    %c0_i32_0 = arith.constant 0 : i32
    %c0_i32_1 = arith.constant 0 : i32
    return %c0_i32, %c0_i32_0 : i32, i32
  }
}

</mosaic_0001>

<bundles_post_ra>
// kernel: tpu_custom_call.1
= control target key start
LH: loop header
LB: loop body
LE: loop exit
PB: predicated region body
PF: predicated region fallthrough
CT: control target
= control target key end

     0   :  { %14 = vsyncpa [#allocation3], 0  ;;  %s2998_s0 = inlined_call_operand.hbm [shape: f32[2,8,32], index: 0, kind: input, shape index: {}]   ;;  %s2999_s1 = inlined_call_operand.vmem [shape: f32[2,16], index: 1, kind: input, shape index: {}]   ;;  %s3000_s2 = inlined_call_operand.hbm [shape: f32[32,32], index: 2, kind: input, shape index: {}]   ;;  %s3001_s3 = inlined_call_operand.vmem [shape: f32[1,32], index: 3, kind: input, shape index: {}]   ;;  %s3002_s4 = inlined_call_operand.hbm [shape: f32[16,32], index: 4, kind: input, shape index: {}]   ;;  %s3003_s5 = inlined_call_operand.vmem [shape: f32[1,32], index: 5, kind: input, shape index: {}]   ;;  %s3004_s6 = inlined_call_operand.vmem [shape: f32[1,32], index: 6, kind: input, shape index: {}]   ;;  %s3005_s7 = inlined_call_operand.hbm [shape: f32[2,32], index: 7, kind: output, shape index: {0}]   ;;  %s3006_s8 = inlined_call_operand.hbm [shape: f32[2,8], index: 8, kind: output, shape index: {1}]  }
   0x1   :  { %15 = vsyncpa [#allocation6], 0 }
   0x2   :  { %16 = vsyncpa [#allocation4], 0 }
   0x3   :  { %17 = vsyncpa [#allocation10], 0  ;;  %s2662_s27 = smov [#allocation5]   ;;  %s2663_s29 = smov [#allocation2]  }
   0x4   :  { %s37_s28 = sshll.u32 %s2662_s27, 4  ;;  %s23_s30 = sshll.u32 %s2663_s29, 4  ;;  %s38_s28 = int_to_ptr.vmem [resolvable:$true] %s37_s28  ;;  %s2719_s30 = int_to_ptr.vmem [resolvable:$true] %s23_s30 }
   0x5   :  { %s2544_s11 = scalar_lea.hbm %s3000_s2, 512 }
   0x6   :  { %p2545_p0 = scmp.ne.s32.totalorder %s3000_s2, %s2544_s11  ;;  %p2548_p1 = scmp.lt.u32.totalorder %s2544_s11, %s3000_s2 }
   0x8   :  { %p2550_p2 = pnand %p2548_p1, %p2545_p0 }
   0xa   :  { %2553 = shalt.err (!%p2550_p2)
}
   0xb   :  { %s2554_s16 = scalar_lea.vmem %s38_s28, 512  ;;  %p2559_p4 = scmp.lt.s32.totalorder %s38_s28, %s38_s28 }
   0xc   :  { %p2555_p3 = scmp.ne.s32.totalorder %s38_s28, %s2554_s16  ;;  %p2560_p5 = scmp.lt.s32.totalorder %s2554_s16, %s2554_s16 }
   0xe   :  { %p2561_p6 = por %p2560_p5, %p2559_p4 }
  0x10   :  { %p2562_p7 = pnand %p2561_p6, %p2555_p3 }
  0x12   :  { %2565 = shalt.err (!%p2562_p7)
}
  0x13   :  { %s2664_s17 = smov 128   ;;  %s2665_s18 = smov 8  }
  0x14   :  { %43 = dma.hbm_to_vmem [thread:$0]  %s3000_s2, 512, %s38_s28, [#allocation6], %s2664_s17, %s2664_s17, %s2665_s18  }
  0x15   :  { %s2566_s23 = scalar_lea.hbm %s2998_s0, 256 }
  0x16   :  { %p2567_p8 = scmp.ne.s32.totalorder %s2998_s0, %s2566_s23  ;;  %p2570_p9 = scmp.lt.u32.totalorder %s2566_s23, %s2998_s0 }
  0x18   :  { %p2572_p10 = pnand %p2570_p9, %p2567_p8 }
  0x1a   :  { %2575 = shalt.err (!%p2572_p10)
}
  0x1b   :  { %s2576_s29 = scalar_lea.vmem %s2719_s30, 256  ;;  %p2581_p12 = scmp.lt.s32.totalorder %s2719_s30, %s2719_s30 }
  0x1c   :  { %p2577_p11 = scmp.ne.s32.totalorder %s2719_s30, %s2576_s29  ;;  %p2582_p13 = scmp.lt.s32.totalorder %s2576_s29, %s2576_s29 }
  0x1e   :  { %p2583_p0 = por %p2582_p13, %p2581_p12 }
  0x20   :  { %p2584_p1 = pnand %p2583_p0, %p2577_p11 }
  0x22   :  { %2587 = shalt.err (!%p2584_p1)
}
  0x23   :  { %29 = dma.hbm_to_vmem [thread:$0]  %s2998_s0, 256, %s2719_s30, [#allocation3], %s2664_s17, %s2664_s17, %s2665_s18  }
  0x24   :  { %s2666_s9 = smov [#allocation7]   ;;  %s2588_s13 = scalar_lea.hbm %s3002_s4, 256 }
  0x25   :  { %s51_s10 = sshll.u32 %s2666_s9, 4  ;;  %p2589_p2 = scmp.ne.s32.totalorder %s3002_s4, %s2588_s13  ;;  %s52_s10 = int_to_ptr.vmem [resolvable:$true] %s51_s10 }
  0x26   :  { %p2592_p3 = scmp.lt.u32.totalorder %s2588_s13, %s3002_s4 }
  0x28   :  { %p2594_p4 = pnand %p2592_p3, %p2589_p2 }
  0x2a   :  { %2597 = shalt.err (!%p2594_p4)
}
  0x2b   :  { %s2598_s20 = scalar_lea.vmem %s52_s10, 256  ;;  %p2603_p6 = scmp.lt.s32.totalorder %s52_s10, %s52_s10 }
  0x2c   :  { %p2599_p5 = scmp.ne.s32.totalorder %s52_s10, %s2598_s20  ;;  %p2604_p7 = scmp.lt.s32.totalorder %s2598_s20, %s2598_s20 }
  0x2e   :  { %p2605_p8 = por %p2604_p7, %p2603_p6 }
  0x30   :  { %p2606_p9 = pnand %p2605_p8, %p2599_p5 }
  0x32   :  { %2609 = shalt.err (!%p2606_p9)
}
  0x33   :  { %57 = dma.hbm_to_vmem [thread:$0]  %s3002_s4, 256, %s52_s10, [#allocation6], %s2664_s17, %s2664_s17, %s2665_s18  }
  0x34   :  { %2654 = dma.done.wait [#allocation3], 256  }
  0x35   :  { %2655 = vsyncadd [#allocation3], 4294967040 }
  0x36   :  { %2656 = dma.done.wait [#allocation6], 768  }
  0x37   :  { %2657 = vsyncadd [#allocation6], 4294966528  ;;  %vm77_vm0 = vcmask 261120   ;;  %v73_v0 = vld [vmem:[#allocation5] sm:$0xff]  ;;  %v74_v1 = vld [vmem:[#allocation5 + $0x8] sm:$0xff]  ;;  %vm615_vm1 = vcmask 130048  }
  0x38   :  { %v75_v2 = vld [vmem:[#allocation5 + $0x10] sm:$0xff]  ;;  %v85_v3 = vand.u32 4294901760, %v73_v0  ;;  %v88_v4 = vand.u32 4294901760, %v74_v1  ;;  %v76_v5 = vld [vmem:[#allocation5 + $0x18] sm:$0xff]  ;;  %v613_v12 = vld [vmem:[#allocation7] sm:$0xff]  ;;  %v2667_v48 = vmov 0.0|0.0  }
  0x39   :  { %v91_v6 = vand.u32 4294901760, %v75_v2  ;;  %v2771_v7 = vld [vmem:[#allocation2] sm:$0xff]  ;;  %v2773_v8 = vld [vmem:[#allocation2 + $0x8] sm:$0xff]  ;;  %v94_v9 = vand.u32 4294901760, %v76_v5  ;;  %v614_v13 = vld [vmem:[#allocation7 + $0x8] sm:$0xff]  ;;  %v620_v20 = vand.u32 4294901760, %v613_v12 }
  0x3a   :  { %v79_v10 = vsel %vm77_vm0, %v2771_v7, 0  ;;  %v82_v11 = vsel %vm77_vm0, %v2773_v8, 0  ;;  %v2779_v14 = vpack.c.bf16 %v88_v4, %v85_v3  ;;  %v2785_v17 = vsub.f32 %v73_v0, %v85_v3  ;;  %v612_v26 = vld [vmem:[%s2999_s1] sm:$0x3] }
  0x3b   :  { %v2781_v15 = vand.u32 4294901760, %v79_v10  ;;  %v2783_v16 = vand.u32 4294901760, %v82_v11  ;;  %v2787_v18 = vpack.c.bf16 %v94_v9, %v91_v6  ;;  %v2789_v19 = vsub.f32 %v74_v1, %v88_v4 }
  0x3c   :  { %v623_v21 = vand.u32 4294901760, %v614_v13  ;;  %2414 = vmatprep.subr.bf16.mxu1 %v2779_v14  ;;  %v176_v24 = vand.u32 4294901760, %v2785_v17  ;;  %v2799_v25 = vsub.f32 %v75_v2, %v91_v6  ;;  %v2807_v28 = vsub.f32 %v613_v12, %v620_v20 }
  0x3d   :  { %v2793_v22 = vsub.f32 %v79_v10, %v2781_v15  ;;  %v2796_v23 = vsub.f32 %v82_v11, %v2783_v16  ;;  %2264 = vmatprep.mubr.f32.mxu0 %v2781_v15  ;;  %2416 = vmatpush3.bf16.msra.mxu1 %v2779_v14  ;;  %v183_v27 = vand.u32 4294901760, %v2789_v19  ;;  %v2821_v35 = vsub.f32 %v76_v5, %v94_v9 }
  0x3e   :  { %v2809_v29 = vsub.f32 %v614_v13, %v623_v21  ;;  %2418 = vmatprep.subr.bf16.mxu1 %v2787_v18  ;;  %v177_v32 = vsub.f32 %v2785_v17, %v176_v24  ;;  %v190_v33 = vand.u32 4294901760, %v2799_v25  ;;  %v617_v36 = vsel %vm615_vm1, %v612_v26, 0 }
  0x3f   :  { %v155_v30 = vand.u32 4294901760, %v2793_v22  ;;  %v165_v31 = vand.u32 4294901760, %v2796_v23  ;;  %v184_v34 = vsub.f32 %v2789_v19, %v183_v27  ;;  %v699_v37 = vand.u32 4294901760, %v2807_v28 }
  0x40   :  { %v178_v40 = vand.u32 4294901760, %v177_v32  ;;  %v191_v41 = vsub.f32 %v2799_v25, %v190_v33  ;;  %v197_v43 = vand.u32 4294901760, %v2821_v35  ;;  %v2836_v44 = vand.u32 4294901760, %v617_v36 }
  0x41   :  { %v156_v38 = vsub.f32 %v2793_v22, %v155_v30  ;;  %v166_v39 = vsub.f32 %v2796_v23, %v165_v31  ;;  %2420 = vmatpush3.bf16.msra.mxu1 %v2787_v18  ;;  %v185_v42 = vand.u32 4294901760, %v184_v34  ;;  %v700_v45 = vsub.f32 %v2807_v28, %v699_v37 }
  0x42   :  { %2461 = vmatprep.subr.bf16.mxu1 %v2667_v48  ;;  %v2842_v49 = vpack.c.bf16 %v623_v21, %v620_v20  ;;  %v706_v50 = vand.u32 4294901760, %v2809_v29  ;;  %v192_v52 = vand.u32 4294901760, %v191_v41  ;;  %v198_v53 = vsub.f32 %v2821_v35, %v197_v43  ;;  %v1078_v21 = vld [vmem:[%s3001_s3] sm:$0x1] }
  0x43   :  { %v157_v46 = vand.u32 4294901760, %v156_v38  ;;  %v167_v47 = vand.u32 4294901760, %v166_v39  ;;  %v2421_v51 = vpack.c.bf16 %v185_v42, %v178_v40  ;;  %v687_v54 = vsub.f32 %v617_v36, %v2836_v44  ;;  %v2166_v38 = vld [vmem:[%s3004_s6] ss:$0 sm:$0xff]  ;;  %s2672_s6 = smov [#allocation9]  }
  0x44   :  { %v701_v55 = vand.u32 4294901760, %v700_v45  ;;  %v707_v56 = vsub.f32 %v2809_v29, %v706_v50  ;;  %v199_v57 = vand.u32 4294901760, %v198_v53  ;;  %vm2668_vm2 = vmmov 0   ;;  %s2152_s23 = sshll.u32 %s2672_s6, 4  ;;  %s2153_s23 = int_to_ptr.vmem [resolvable:$true] %s2152_s23 }
  0x45   :  { %2253 = vmatprep.mubr.f32.mxu1 %v157_v46  ;;  %2422 = vmatprep.subr.bf16.mxu0 %v2421_v51  ;;  %v688_v58 = vand.u32 4294901760, %v687_v54  ;;  %v2669_v60 = vmov 0.0   ;;  %v2429_v63 = vpack.c.bf16 %v2789_v19, %v2785_v17  ;;  %v2433_v2 = vpack.c.bf16 %v2821_v35, %v2799_v25  ;;  %s2610_s24 = scalar_lea.vmem %s2153_s23, 32  ;;  %p2615_p11 = scmp.lt.s32.totalorder %s2153_s23, %s2153_s23 }
  0x46   :  { %2254 = vmatmul.mubr.f32.vlgmr.msra.gmra.mrb[0].mxu1 %v167_v47  ;;  %2424 = vmatpush3.bf16.msra.mxu0 %v2421_v51  ;;  %v708_v59 = vand.u32 4294901760, %v707_v56  ;;  %v2425_v61 = vpack.c.bf16 %v199_v57, %v192_v52  ;;  %v2468_v3 = vpack.c.bf16 %v2809_v29, %v2807_v28  ;;  %v2445_v4 = vpack.c.bf16 %v183_v27, %v176_v24  ;;  %p2611_p10 = scmp.ne.s32.totalorder %s2153_s23, %s2610_s24  ;;  %p2616_p12 = scmp.lt.s32.totalorder %s2610_s24, %s2610_s24 }
  0x47   :  { %2463 = vmatpush3.bf16.msra.mxu1 %v2842_v49  ;;  %2315 = vmatprep.mubr.msk.f32.mxu1 %vm2668_vm2, %v2669_v60  ;;  %v689_v62 = vsub.f32 %v687_v54, %v688_v58  ;;  %v2449_v5 = vpack.c.bf16 %v197_v43, %v190_v33  ;;  %v2474_v6 = vpack.c.bf16 %v706_v50, %v699_v37  ;;  %v2670_v11 = vmov 1966171168  }
  0x48   :  { %2464 = vmatprep.subr.bf16.mxu1 %v2667_v48  ;;  %v2465_v0 = vpack.c.bf16 %v708_v59, %v701_v55  ;;  %2426 = vmatprep.subr.bf16.mxu0 %v2425_v61  ;;  %v1083_v12 = vunpack.c.l.s4 %v2670_v11  ;;  %v1085_v13 = vlaneseq  ;;  %vm1153_vm3 = vcmask 1041409   ;;  %p2617_p13 = por %p2616_p12, %p2615_p11 }
  0x49   :  { %v690_v1 = vand.u32 4294901760, %v689_v62  ;;  %vm1156_vm4 = vcmask 58368   ;;  %v2671_v53 = vmov 0   ;;  %vm1221_vm5 = vcmask 64512  }
  0x4a   :  { %2428 = vmatpush3.bf16.msra.mxu0 %v2425_v61  ;;  %v1144_v45 = vand.u32 127, %v1085_v13  ;;  %2531 = vset.pattern.permute.xlu0 %v2671_v53  ;;  %p2618_p0 = pnand %p2617_p13, %p2611_p10 }
  0x4b   :  { %2316 = vmatmul.mubr.f32.vlgmr.msra.gmra.mrb[2].mxu1 %v690_v1  ;;  %2430 = vmatprep.subr.bf16.mxu0 %v2429_v63 }
  0x4c   :  { %2466 = vmatpush3.bf16.msra.mxu1 %v2465_v0  ;;  %2322 = vmatprep.mubr.msk.f32.mxu1 %vm2668_vm2, %v2669_v60 }
  0x4d   :  { %2265 = vmatmul.mubr.f32.vlgmr.msra.gmra.mrb[0].mxu0 %v2783_v16  ;;  %2467 = vmatprep.subr.bf16.mxu1 %v2667_v48 }
  0x4e   :  { %2432 = vmatpush3.bf16.msra.mxu0 %v2429_v63  ;;  %2275 = vmatprep.mubr.f32.mxu0 %v2793_v22  ;;  %v1079_v22 = vld [vmem:[%s3003_s5] sm:$0x1] }
  0x4f   :  { %2434 = vmatprep.subr.bf16.mxu0 %v2433_v2  ;;  %v1080_v24 = vadd.f32 %v1079_v22, %v1078_v21  ;;  %2530 = vset.pattern.permute.xlu1 %v2671_v53  ;;  %v1225_v21 = vand.u32 4294901760, %v2771_v7 }
  0x51   :  { %v1302_v22 = vsub.f32 %v2771_v7, %v1225_v21 }
  0x52   :  { %2436 = vmatpush3.bf16.msra.mxu0 %v2433_v2 }
  0x53   :  { %2323 = vmatmul.mubr.f32.vlgmr.msra.gmra.mrb[2].mxu1 %v2836_v44  ;;  %2438 = vmatprep.subr.bf16.mxu0 %v2779_v14 }
  0x54   :  { %2469 = vmatpush3.bf16.msra.mxu1 %v2468_v3  ;;  %2329 = vmatprep.mubr.msk.f32.mxu1 %vm2668_vm2, %v2669_v60 }
  0x55   :  { %2276 = vmatmul.mubr.f32.vlgmr.msra.gmra.mrb[0].mxu0 %v2796_v23  ;;  %2470 = vmatprep.subr.bf16.mxu1 %v2667_v48 }
  0x56   :  { %2440 = vmatpush3.bf16.msra.mxu0 %v2779_v14  ;;  %2286 = vmatprep.mubr.f32.mxu0 %v155_v30 }
  0x57   :  { %2442 = vmatprep.subr.bf16.mxu0 %v2787_v18 }
  0x5a   :  { %2444 = vmatpush3.bf16.msra.mxu0 %v2787_v18 }
  0x5b   :  { %2330 = vmatmul.mubr.f32.vlgmr.msra.gmra.mrb[2].mxu1 %v687_v54  ;;  %2446 = vmatprep.subr.bf16.mxu0 %v2445_v4 }
  0x5c   :  { %2472 = vmatpush3.bf16.msra.mxu1 %v2842_v49  ;;  %2336 = vmatprep.mubr.msk.f32.mxu1 %vm2668_vm2, %v2669_v60 }
  0x5d   :  { %2287 = vmatmul.mubr.f32.vlgmr.msra.gmra.mrb[0].mxu0 %v165_v31  ;;  %2473 = vmatprep.subr.bf16.mxu1 %v2667_v48 }
  0x5e   :  { %2448 = vmatpush3.bf16.msra.mxu0 %v2445_v4  ;;  %2297 = vmatprep.mubr.f32.mxu0 %v2781_v15 }
  0x5f   :  { %2450 = vmatprep.subr.bf16.mxu0 %v2449_v5 }
  0x62   :  { %2452 = vmatpush3.bf16.msra.mxu0 %v2449_v5 }
  0x63   :  { %2337 = vmatmul.mubr.f32.vlgmr.msra.gmra.mrb[2].mxu1 %v688_v58  ;;  %2454 = vmatprep.subr.bf16.mxu0 %v2779_v14 }
  0x64   :  { %2475 = vmatpush3.bf16.msra.mxu1 %v2474_v6  ;;  %2343 = vmatprep.mubr.msk.f32.mxu1 %vm2668_vm2, %v2669_v60 }
  0x65   :  { %2298 = vmatmul.mubr.f32.vlgmr.msra.gmra.mrb[0].mxu0 %v2783_v16  ;;  %2476 = vmatprep.subr.bf16.mxu1 %v2667_v48 }
  0x66   :  { %2456 = vmatpush3.bf16.msra.mxu0 %v2779_v14  ;;  %2308 = vmatprep.mubr.f32.mxu0 %v2781_v15  ;;  %v1084_v14 = vunpack.c.0.s8 %v1083_v12  ;;  %v2910_v15 = vshrl.u32 %v1085_v13, 7  ;;  %v2932_v13 = vand.u32 4294901760, %v2773_v8 }
  0x67   :  { %2458 = vmatprep.subr.bf16.mxu0 %v2787_v18 }
  0x68   :  { %v1087_v20 = vsub.s32 %v1084_v14, %v2910_v15  ;;  %v1106_v26 = vsub.s32 0, %v2910_v15  ;;  %v1147_v47 = vsub.s32 %v1144_v45, %v2910_v15  ;;  %v1167_v54 = vsub.s32 1, %v2910_v15 }
  0x6a   :  { %2460 = vmatpush3.bf16.msra.mxu0 %v2787_v18  ;;  %v1120_v32 = vrot.slane %v1080_v24, %v1106_v26 }
  0x6b   :  { %2344 = vmatmul.mubr.f32.vlgmr.msra.gmra.mrb[2].mxu1 %v2836_v44  ;;  %2388 = vmatprep.subr.mxu0 %v2669_v60 }
  0x6c   :  { %2478 = vmatpush3.bf16.msra.mxu1 %v2842_v49  ;;  %2350 = vmatprep.mubr.msk.f32.mxu1 %vm2668_vm2, %v2669_v60 }
  0x6d   :  { %2309 = vmatmul.mubr.f32.vlgmr.msra.gmra.mrb[0].mxu0 %v2783_v16  ;;  %2353 = vmatprep.subr.mxu1 %v2669_v60 }
  0x6e   :  { %2390 = vmatprep.mubr.msk.f32.mxu0 %vm2668_vm2, %v2669_v60 }
  0x73   :  { %2351 = vmatmul.mubr.f32.vlgmr.msra.gmra.mrb[2].mxu1 %v2836_v44 }
  0x74   :  { %2355 = vmatprep.mubr.msk.f32.mxu1 %vm2668_vm2, %v2669_v60  ;;  %2354 = vmatpush3.msra.mxu1 %v1225_v21 }
  0x75   :  { %2358 = vmatprep.subr.mxu1 %v2669_v60 }
 0x119   :  { %v2255_v9 = vpop.f32.mrb[0].mxu1 }
 0x11a   :  { %v159_v10 = vpop.f32.mrb[1].mxu1 }
 0x140   :  { %v2310_v17 = vpop.f32.mrb[0].mxu0 }
 0x141   :  { %v2479_v16 = vadd.f32 %v2310_v17, %v2255_v9  ;;  %v602_v18 = vpop.f32.mrb[1].mxu0  ;;  %v1758_v17 = vsub.f32 %v2773_v8, %v2932_v13  ;;  %v1303_v8 = vand.u32 4294901760, %v1302_v22 }
 0x142   :  { %v2480_v19 = vadd.f32 %v602_v18, %v159_v10 }
 0x143   :  { %v1759_v18 = vand.u32 4294901760, %v1758_v17 }
 0x146   :  { %v1074_v23 = vpop.f32.mrb[2].mxu1 }
 0x147   :  { %v1088_v25 = vrot.slane %v1074_v23, %v1087_v20  ;;  %v2352_v27 = vpop.f32.mrb[3].mxu1 }
 0x149   :  { %v1089_v28 = vcombine.high %v1088_v25, %v1088_v25  ;;  %v1096_v29 = vrot.slane %v1088_v25, %v1087_v20 }
 0x14b   :  { %v1103_v30 = vrot.slane %v1089_v28, %v1087_v20  ;;  %v1107_v31 = vrot.slane %v1096_v29, %v1106_v26 }
 0x14d   :  { %v1111_v33 = vrot.slane %v1103_v30, %v1106_v26  ;;  %v1114_v34 = vadd.f32 %v2480_v19, %v1107_v31  ;;  %v1760_v19 = vsub.f32 %v1758_v17, %v1759_v18  ;;  %v1304_v31 = vsub.f32 %v1302_v22, %v1303_v8 }
 0x14f   :  { %v1115_v35 = vadd.f32 %v2479_v16, %v1111_v33  ;;  %v1122_v36 = vadd.f32 %v1120_v32, %v1114_v34  ;;  %v1761_v20 = vand.u32 4294901760, %v1760_v19  ;;  %v1305_v7 = vand.u32 4294901760, %v1304_v31 }
 0x151   :  { %v1123_v37 = vadd.f32 %v1120_v32, %v1115_v35  ;;  %2532 = vtanh.f32 %v1122_v36  ;;  %2389 = vmatpush3.msra.mxu0 %v1761_v20 }
 0x152   :  { %2393 = vmatprep.subr.mxu0 %v2669_v60 }
 0x153   :  { %2534 = vtanh.f32 %v1123_v37 }
 0x15b   :  { %v2533_v39 = vpop.eup %2532 }
 0x15c   :  { %v1133_v40 = vmul.f32 %v2533_v39, %v2166_v38 }
 0x15d   :  { %v2535_v41 = vpop.eup %2534 }
 0x15e   :  { %v1135_v42 = vsel %vm77_vm0, %v1133_v40, 0.0  ;;  %v1134_v43 = vmul.f32 %v2535_v41, %v2166_v38 }
 0x15f   :  { %1136 = vadd.xlane.f32.xlu0 %v1135_v42 }
 0x160   :  { %v1138_v44 = vsel %vm77_vm0, %v1134_v43, 0.0 }
 0x163   :  { %1139 = vadd.xlane.f32.xlu0 %v1138_v44 }
 0x1ec   :  { %v1137_v46 = vpop.xlane.xlu0 %1136 }
 0x1ed   :  { %v1148_v49 = vrot.slane %v1137_v46, %v1147_v47 }
 0x1f0   :  { %v1140_v48 = vpop.xlane.xlu0 %1139 }
 0x1f1   :  { %v1152_v50 = vrot.slane %v1140_v48, %v1147_v47 }
 0x1f3   :  { %v1154_v51 = vsel %vm1153_vm3, %v1152_v50, %v1148_v49 }
 0x1f4   :  { %v1157_v52 = vsel %vm1156_vm4, %v1154_v51, -inf }
 0x1f5   :  { %1158 = vmax.xlane.f32.xlu1 %v1157_v52 }
 0x282   :  { %v1159_v55 = vpop.xlane.xlu1 %1158 }
 0x283   :  { %v1164_v56 = vrot.slane %v1159_v55, %v1106_v26  ;;  %v1168_v57 = vrot.slane %v1159_v55, %v1167_v54 }
 0x285   :  { %v1171_v58 = vsub.f32 %v1137_v46, %v1164_v56  ;;  %v1172_v59 = vsub.f32 %v1140_v48, %v1168_v57 }
 0x287   :  { %v1173_v61 = vmul.f32 1.442695, %v1171_v58  ;;  %v1175_v62 = vmul.f32 1.442695, %v1172_v59 }
 0x289   :  { %2536 = vpow2.f32 %v1173_v61 }
 0x28a   :  { %2538 = vpow2.f32 %v1175_v62 }
 0x293   :  { %v2537_v63 = vpop.eup %2536 }
 0x294   :  { %v2539_v0 = vpop.eup %2538  ;;  %1180 = vperm.xlu1 %2530, %v2537_v63  }
 0x295   :  { %1183 = vperm.xlu0 %2531, %v2539_v0  }
 0x313   :  { %v1181_v1 = vpop.permute.xlu1 %1180 }
 0x314   :  { %v1184_v2 = vpop.permute.xlu0 %1183  ;;  %v1188_v3 = vrot.slane %v1181_v1, %v1147_v47 }
 0x315   :  { %v1192_v4 = vrot.slane %v1184_v2, %v1147_v47 }
 0x317   :  { %v1193_v5 = vsel %vm1153_vm3, %v1192_v4, %v1188_v3 }
 0x318   :  { %v1195_v6 = vsel %vm1156_vm4, %v1193_v5, 0.0 }
 0x319   :  { %1196 = vadd.xlane.f32.xlu1 %v1195_v6 }
 0x3a6   :  { %v1197_v9 = vpop.xlane.xlu1 %1196 }
 0x3a7   :  { %v1202_v10 = vrot.slane %v1197_v9, %v1106_v26  ;;  %v1206_v11 = vrot.slane %v1197_v9, %v1167_v54 }
 0x3a9   :  { %2540 = vrcp.f32 %v1202_v10 }
 0x3aa   :  { %2542 = vrcp.f32 %v1206_v11 }
 0x3b3   :  { %v2541_v12 = vpop.eup %2540 }
 0x3b4   :  { %v1210_v14 = vmul.f32 %v2541_v12, %v2537_v63  ;;  %v2543_v15 = vpop.eup %2542 }
 0x3b5   :  { %v1212_v16 = vmul.f32 %v2543_v15, %v2539_v0 }
 0x3b6   :  { %1215 = vperm.xlu0 %2531, %v1210_v14  }
 0x3ba   :  { %1672 = vperm.xlu0 %2531, %v1212_v16  }
 0x435   :  { %v1216_v23 = vpop.permute.xlu0 %1215 }
 0x436   :  { %v1220_v24 = vrot.slane %v1216_v23, %v1147_v47 }
 0x438   :  { %v1222_v25 = vsel %vm1221_vm5, %v1220_v24, 0 }
 0x439   :  { %v1290_v26 = vand.u32 4294901760, %v1222_v25  ;;  %v1673_v27 = vpop.permute.xlu0 %1672 }
 0x43a   :  { %v1677_v28 = vrot.slane %v1673_v27, %v1147_v47 }
 0x43b   :  { %v1291_v29 = vsub.f32 %v1222_v25, %v1290_v26 }
 0x43c   :  { %v1678_v30 = vsel %vm1221_vm5, %v1677_v28, 0  ;;  %v2133_v32 = vsel %vm1153_vm3, %v1677_v28, %v1220_v24 }
 0x43d   :  { %v1292_v33 = vand.u32 4294901760, %v1291_v29  ;;  %v1746_v34 = vand.u32 4294901760, %v1678_v30  ;;  %2135 = vst.msk [vmem:[#allocation9] sm:$0x3] %vm1156_vm4, %v2133_v32 }
 0x43f   :  { %2391 = vmatmul.mubr.f32.vlgmr.msra.gmra.mrb[2].mxu0 %v1746_v34  ;;  %v1293_v35 = vsub.f32 %v1291_v29, %v1292_v33  ;;  %v1747_v37 = vsub.f32 %v1678_v30, %v1746_v34 }
 0x440   :  { %2394 = vmatpush3.msra.mxu0 %v1758_v17  ;;  %2395 = vmatprep.mubr.msk.f32.mxu0 %vm2668_vm2, %v2669_v60 }
 0x441   :  { %v1294_v36 = vand.u32 4294901760, %v1293_v35  ;;  %2398 = vmatprep.subr.mxu0 %v2669_v60  ;;  %v1748_v38 = vand.u32 4294901760, %v1747_v37 }
 0x443   :  { %2356 = vmatmul.mubr.f32.vlgmr.msra.gmra.mrb[4].mxu1 %v1294_v36  ;;  %v1749_v39 = vsub.f32 %v1747_v37, %v1748_v38 }
 0x444   :  { %2359 = vmatpush3.msra.mxu1 %v1305_v7  ;;  %2360 = vmatprep.mubr.msk.f32.mxu1 %vm2668_vm2, %v2669_v60 }
 0x445   :  { %2363 = vmatprep.subr.mxu1 %v2669_v60  ;;  %v1750_v40 = vand.u32 4294901760, %v1749_v39 }
 0x447   :  { %2396 = vmatmul.mubr.f32.vlgmr.msra.gmra.mrb[2].mxu0 %v1747_v37 }
 0x448   :  { %2399 = vmatpush3.msra.mxu0 %v2932_v13  ;;  %2400 = vmatprep.mubr.msk.f32.mxu0 %vm2668_vm2, %v2669_v60 }
 0x449   :  { %2403 = vmatprep.subr.mxu0 %v2669_v60 }
 0x44b   :  { %2361 = vmatmul.mubr.f32.vlgmr.msra.gmra.mrb[4].mxu1 %v1290_v26 }
 0x44c   :  { %2364 = vmatpush3.msra.mxu1 %v1302_v22  ;;  %2365 = vmatprep.mubr.msk.f32.mxu1 %vm2668_vm2, %v2669_v60 }
 0x44d   :  { %2368 = vmatprep.subr.mxu1 %v2669_v60 }
 0x44f   :  { %2401 = vmatmul.mubr.f32.vlgmr.msra.gmra.mrb[2].mxu0 %v1748_v38 }
 0x450   :  { %2404 = vmatpush3.msra.mxu0 %v1759_v18  ;;  %2405 = vmatprep.mubr.msk.f32.mxu0 %vm2668_vm2, %v2669_v60 }
 0x451   :  { %2408 = vmatprep.subr.mxu0 %v2669_v60 }
 0x453   :  { %2366 = vmatmul.mubr.f32.vlgmr.msra.gmra.mrb[4].mxu1 %v1291_v29 }
 0x454   :  { %2369 = vmatpush3.msra.mxu1 %v1225_v21  ;;  %2370 = vmatprep.mubr.msk.f32.mxu1 %vm2668_vm2, %v2669_v60 }
 0x455   :  { %2373 = vmatprep.subr.mxu1 %v2669_v60 }
 0x457   :  { %2406 = vmatmul.mubr.f32.vlgmr.msra.gmra.mrb[2].mxu0 %v1746_v34 }
 0x458   :  { %2409 = vmatpush3.msra.mxu0 %v2932_v13  ;;  %2410 = vmatprep.mubr.msk.f32.mxu0 %vm2668_vm2, %v2669_v60 }
 0x45b   :  { %2371 = vmatmul.mubr.f32.vlgmr.msra.gmra.mrb[4].mxu1 %v1292_v33 }
 0x45c   :  { %2374 = vmatpush3.msra.mxu1 %v1303_v8  ;;  %2375 = vmatprep.mubr.msk.f32.mxu1 %vm2668_vm2, %v2669_v60 }
 0x45d   :  { %2378 = vmatprep.subr.mxu1 %v2669_v60 }
 0x45f   :  { %2411 = vmatmul.mubr.f32.vlgmr.msra.gmra.mrb[2].mxu0 %v1746_v34 }
 0x463   :  { %2376 = vmatmul.mubr.f32.vlgmr.msra.gmra.mrb[4].mxu1 %v1290_v26 }
 0x464   :  { %2379 = vmatpush3.msra.mxu1 %v1225_v21  ;;  %2380 = vmatprep.mubr.msk.f32.mxu1 %vm2668_vm2, %v2669_v60 }
 0x465   :  { %2383 = vmatprep.subr.mxu1 %v2669_v60 }
 0x46b   :  { %2381 = vmatmul.mubr.f32.vlgmr.msra.gmra.mrb[4].mxu1 %v1290_v26 }
 0x46c   :  { %2384 = vmatpush3.msra.mxu1 %v2932_v13  ;;  %2385 = vmatprep.mubr.msk.f32.mxu1 %vm2668_vm2, %v2669_v60 }
 0x46f   :  { %2386 = vmatmul.mubr.f32.vlgmr.msra.gmra.mrb[6].mxu1 %v1750_v40 }
 0x470   :  { %2621 = shalt.err (!%p2618_p0)
}
 0x471   :  { %s2622_s27 = scalar_lea.hbm %s3006_s8, 32 }
 0x472   :  { %p2623_p1 = scmp.ne.s32.totalorder %s3006_s8, %s2622_s27  ;;  %p2626_p2 = scmp.lt.u32.totalorder %s2622_s27, %s3006_s8 }
 0x474   :  { %p2628_p3 = pnand %p2626_p2, %p2623_p1 }
 0x476   :  { %2631 = shalt.err (!%p2628_p3)
}
 0x477   :  { %2155 = dma.vmem_to_hbm [thread:$0]  %s2153_s23, 32, %s3006_s8, [#allocation10]   ;;  %vm2131_vm6 = vcmask 254976  }
 0x478   :  { %s2673_s12 = smov [#allocation8]  }
 0x479   :  { %s2142_s13 = sshll.u32 %s2673_s12, 4  ;;  %s2143_s13 = int_to_ptr.vmem [resolvable:$true] %s2142_s13 }
 0x47a   :  { %s2632_s14 = scalar_lea.vmem %s2143_s13, 32  ;;  %p2637_p5 = scmp.lt.s32.totalorder %s2143_s13, %s2143_s13 }
 0x47b   :  { %p2633_p4 = scmp.ne.s32.totalorder %s2143_s13, %s2632_s14  ;;  %p2638_p6 = scmp.lt.s32.totalorder %s2632_s14, %s2632_s14 }
 0x47d   :  { %p2639_p7 = por %p2638_p6, %p2637_p5 }
 0x47f   :  { %p2640_p8 = pnand %p2639_p7, %p2633_p4 }
 0x532   :  { %v2122_v60 = vpop.f32.mrb[2].mxu0 }
 0x533   :  { %v2412_v41 = vpop.f32.mrb[3].mxu0 }
 0x53e   :  { %v1666_v42 = vpop.f32.mrb[4].mxu1 }
 0x53f   :  { %v2382_v43 = vpop.f32.mrb[5].mxu1 }
 0x542   :  { %v1752_v44 = vpop.f32.mrb[6].mxu1 }
 0x543   :  { %v2481_v45 = vadd.f32 %v2122_v60, %v1752_v44  ;;  %v2387_v46 = vpop.f32.mrb[7].mxu1 }
 0x545   :  { %v2128_v47 = vrot.slane %v2481_v45, 7 }
 0x547   :  { %v2129_v48 = vsel %vm1153_vm3, %v2128_v47, %v1666_v42 }
 0x548   :  { %2132 = vst.msk [vmem:[#allocation8] sm:$0x3] %vm2131_vm6, %v2129_v48 }
 0x549   :  { %2643 = shalt.err (!%p2640_p8)
}
 0x54a   :  { %s2644_s16 = scalar_lea.hbm %s3005_s7, 32 }
 0x54b   :  { %p2645_p9 = scmp.ne.s32.totalorder %s3005_s7, %s2644_s16  ;;  %p2648_p10 = scmp.lt.u32.totalorder %s2644_s16, %s3005_s7 }
 0x54d   :  { %p2650_p11 = pnand %p2648_p10, %p2645_p9 }
 0x54f   :  { %2653 = shalt.err (!%p2650_p11)
}
 0x550   :  { %2145 = dma.vmem_to_hbm [thread:$0]  %s2143_s13, 32, %s3005_s7, [#allocation4]  }
 0x551   :  { %2658 = dma.done.wait [#allocation4], 32  }
 0x552   :  { %2659 = vsyncadd [#allocation4], 4294967264 }
 0x553   :  { %2660 = dma.done.wait [#allocation10], 32  }
 0x554   :  { %2661 = vsyncadd [#allocation10], 4294967264 }
 0x555   :  { %2162 = vsyncpa [#allocation3], 1 }
 0x556   :  { %2163 = vsyncpa [#allocation6], 1 }
 0x557   :  { %2164 = vsyncpa [#allocation4], 1 }
 0x558   :  { %2165 = vsyncpa [#allocation10], 1 }

</bundles_post_ra>
